<compile_context>
chip_gen: v7x
topology: tpu7x:2x2x1
jax: 0.10.0
libtpu: 0.0.40
codegen_flags: <defaults>
</compile_context>

<pallas_src>
import functools
from typing import NamedTuple

import jax
import jax.numpy as jnp
from jax.experimental import pallas as pl
from jax.experimental.pallas import tpu as pltpu


class AttentionModelFixed(NamedTuple):
    node_embeddings: jax.Array         # (B, N, D)
    context_node_projected: jax.Array  # (B, 1, D)
    glimpse_key: jax.Array             # (n_heads, B, 1, N, head_dim)
    glimpse_val: jax.Array             # (n_heads, B, 1, N, head_dim)
    logit_key: jax.Array               # (B, 1, N, D)


# ----------------------------------------------------------------------------
# Pallas kernel: batch-tiled fused init-embed + node-embedding projection.
# One grid step processes TB batch elements (= TB*N rows).
# ----------------------------------------------------------------------------
def _precompute_kernel(x_ref, w_init_ref, b_init_ref, w_proj_ref, fused_ref):
    node_dim = x_ref.shape[-1]
    # _init_embed on the VPU: K = node_dim (2) is far too shallow for the MXU.
    #   emb = b + sum_d x[:, d] * w_init[d, :]
    emb = b_init_ref[...] + x_ref[:, 0:1] * w_init_ref[0:1, :]
    for d in range(1, node_dim):                       # static unroll, node_dim == 2
        emb = emb + x_ref[:, d:d + 1] * w_init_ref[d:d + 1, :]

    # project_node_embeddings on the MXU: (TB*N, D) @ (D, 3D), f32 accumulation.
    proj = jnp.dot(emb, w_proj_ref[...], preferred_element_type=jnp.float32)

    # Single lane-dense store: [emb | glimpse_key | glimpse_val | logit_key]
    # -> (TB*N, 4D) == 128 lanes wide for D=32 (unmasked vst fast path).
    fused_ref[...] = jnp.concatenate([emb, proj], axis=-1).astype(fused_ref.dtype)


def _pick_batch_tile(B, N, target_rows=512):
    """Largest batch tile TB that divides B, keeps TB*N <= target_rows, keeps the
    second-minor block dim a multiple of 8, and (when possible) leaves >= 2 grid
    steps so both v7x TensorCores get work."""
    divs = [d for d in range(1, B + 1) if B % d == 0]
    legal = [d for d in divs if (d * N) % 8 == 0 or d == B]
    fit = [d for d in legal if d * N <= max(target_rows, N)] or [min(legal)]
    pref = [d for d in fit if B // d >= 2]
    return max(pref) if pref else max(fit)


def precompute_pallas(x, w_init, b_init, w_fixed, w_proj, *, n_heads,
                      target_rows=512):
    """Runs _init_embed + _precompute on TPU via Pallas.

    x:       (B, N, node_dim) float32
    w_init:  (node_dim, D)    b_init: (1, D)
    w_fixed: (D, D)           w_proj: (D, 3D)
    """
    B, N, node_dim = x.shape
    D = w_init.shape[1]
    assert D % n_heads == 0
    head_dim = D // n_heads

    TB = _pick_batch_tile(B, N, target_rows)
    grid = B // TB
    rows = TB * N                       # rows per grid step (multiple of 8)

    x2 = x.reshape(B * N, node_dim)     # free metadata reshape in HBM

    flops = 2 * B * N * D * (3 * D) + 4 * B * N * D
    bytes_accessed = 4 * (B * N * node_dim + node_dim * D + D
                          + D * 3 * D + B * N * 4 * D)

    fused = pl.pallas_call(
        _precompute_kernel,
        out_shape=jax.ShapeDtypeStruct((B * N, 4 * D), jnp.float32),
        grid_spec=pl.GridSpec(
            grid=(grid,),
            in_specs=[
                pl.BlockSpec((rows, node_dim), lambda i: (i, 0)),   # x tile
                pl.BlockSpec((node_dim, D), lambda i: (0, 0)),      # w_init
                pl.BlockSpec((1, D), lambda i: (0, 0)),             # b_init
                pl.BlockSpec((D, 3 * D), lambda i: (0, 0)),         # w_proj
            ],
            out_specs=pl.BlockSpec((rows, 4 * D), lambda i: (i, 0)),
        ),
        compiler_params=pltpu.CompilerParams(
            dimension_semantics=("parallel",)),
        cost_estimate=pl.CostEstimate(
            flops=flops, transcendentals=0, bytes_accessed=bytes_accessed),
    )(x2, w_init, b_init, w_proj)

    fused = fused.reshape(B, N, 4 * D)
    emb = fused[..., :D]                      # node_embeddings
    gk = fused[..., D:2 * D]                  # glimpse_key  (pre-head-split)
    gv = fused[..., 2 * D:3 * D]              # glimpse_val  (pre-head-split)
    lk = fused[..., 3 * D:]                   # logit_key

    # project_fixed_context hoisted out of the kernel: one batched (B,D)@(D,D)
    # matmul; the mean fuses with the emb slice read.
    ctx = (emb.mean(axis=1) @ w_fixed)[:, None, :]          # (B, 1, D)

    def make_heads(v, num_steps=1):
        # (B, N, D) -> (n_heads, B, num_steps, N, head_dim); matches the PyTorch
        # _make_heads view/expand/permute (expand is a no-op for num_steps=1).
        Bv, Nv, _ = v.shape
        v = v.reshape(Bv, 1, Nv, n_heads, head_dim)
        v = jnp.broadcast_to(v, (Bv, num_steps, Nv, n_heads, head_dim))
        return jnp.transpose(v, (3, 0, 1, 2, 4))

    return AttentionModelFixed(
        node_embeddings=emb,
        context_node_projected=ctx,
        glimpse_key=make_heads(gk, 1),
        glimpse_val=make_heads(gv, 1),
        logit_key=lk[:, None, :, :],
    )


# ----------------------------------------------------------------------------
# Pure-JAX reference (for correctness check).
# ----------------------------------------------------------------------------
def precompute_ref(x, w_init, b_init, w_fixed, w_proj, *, n_heads):
    D = w_init.shape[1]
    head_dim = D // n_heads
    emb = x @ w_init + b_init[0]
    ctx = (emb.mean(axis=1) @ w_fixed)[:, None, :]
    proj = emb @ w_proj
    gk, gv, lk = jnp.split(proj[:, None, :, :], 3, axis=-1)

    def make_heads(v):
        Bv, S, Nv, _ = v.shape
        v = v.reshape(Bv, S, Nv, n_heads, head_dim)
        return jnp.transpose(v, (3, 0, 1, 2, 4))

    return AttentionModelFixed(emb, ctx, make_heads(gk), make_heads(gv), lk)


if __name__ == "__main__":
    # Small TSP-flavoured config: node_dim=2, embedding_dim=32, n_heads=8.
    B, N, node_dim = 16, 16, 2
    D, n_heads = 32, 8

    key = jax.random.PRNGKey(0)
    kx, k1, k2, k3, k4 = jax.random.split(key, 5)

    x = jax.random.uniform(kx, (B, N, node_dim), dtype=jnp.float32)
    # Deterministic parameter init (nn.Linear-shaped params, stored as (in, out)).
    w_init = jax.random.normal(k1, (node_dim, D), dtype=jnp.float32) * 0.1
    b_init = jax.random.normal(k2, (1, D), dtype=jnp.float32) * 0.1
    w_fixed = jax.random.normal(k3, (D, D), dtype=jnp.float32) * 0.1
    w_proj = jax.random.normal(k4, (D, 3 * D), dtype=jnp.float32) * 0.1

    fn = jax.jit(functools.partial(precompute_pallas, n_heads=n_heads))
    out = fn(x, w_init, b_init, w_fixed, w_proj)
    jax.block_until_ready(out)

    ref = precompute_ref(x, w_init, b_init, w_fixed, w_proj, n_heads=n_heads)
    for got, want in zip(out, ref):
        assert got.shape == want.shape, (got.shape, want.shape)
        assert bool(jnp.allclose(got, want, atol=1e-4, rtol=1e-4))

    print("KERNEL_OK")
</pallas_src>

<mosaic_0001>
module attributes {stable_mosaic.version = 11 : i64} {
  func.func @_precompute_kernel(%arg0: i32, %arg1: memref<128x2xf32, #tpu.memory_space<vmem>>, %arg2: memref<2x32xf32, #tpu.memory_space<vmem>>, %arg3: memref<1x32xf32, #tpu.memory_space<vmem>>, %arg4: memref<32x96xf32, #tpu.memory_space<vmem>>, %arg5: memref<128x128xf32, #tpu.memory_space<vmem>>) attributes {dimension_semantics = [#tpu.dimension_semantics<parallel>], iteration_bounds = array<i64: 2>, scalar_prefetch = 0 : i64, scratch_operands = 0 : i64, tpu.core_type = #tpu.core_type<tc>, window_params = [{transform_indices = @transform_0, window_bounds = array<i64: 128, 2>}, {pipeline_mode = #tpu.pipeline_mode<synchronous>, transform_indices = @transform_1, window_bounds = array<i64: 2, 32>}, {pipeline_mode = #tpu.pipeline_mode<synchronous>, transform_indices = @transform_2, window_bounds = array<i64: 1, 32>}, {pipeline_mode = #tpu.pipeline_mode<synchronous>, transform_indices = @transform_3, window_bounds = array<i64: 32, 96>}, {transform_indices = @transform_4, window_bounds = array<i64: 128, 128>}]} {
    %c0 = arith.constant 0 : index
    %c0_0 = arith.constant 0 : index
    %0 = vector.load %arg3[%c0, %c0_0] : memref<1x32xf32, #tpu.memory_space<vmem>>, vector<1x32xf32>
    %c0_1 = arith.constant 0 : index
    %c0_2 = arith.constant 0 : index
    %1 = vector.load %arg1[%c0_1, %c0_2] : memref<128x2xf32, #tpu.memory_space<vmem>>, vector<128x1xf32>
    %c0_3 = arith.constant 0 : index
    %c0_4 = arith.constant 0 : index
    %2 = vector.load %arg2[%c0_3, %c0_4] : memref<2x32xf32, #tpu.memory_space<vmem>>, vector<1x32xf32>
    %3 = vector.broadcast %1 : vector<128x1xf32> to vector<128x32xf32>
    %4 = vector.broadcast %2 : vector<1x32xf32> to vector<128x32xf32>
    %5 = arith.mulf %3, %4 : vector<128x32xf32>
    %6 = vector.broadcast %0 : vector<1x32xf32> to vector<128x32xf32>
    %7 = arith.addf %6, %5 : vector<128x32xf32>
    %c0_5 = arith.constant 0 : index
    %c1 = arith.constant 1 : index
    %8 = vector.load %arg1[%c0_5, %c1] : memref<128x2xf32, #tpu.memory_space<vmem>>, vector<128x1xf32>
    %c1_6 = arith.constant 1 : index
    %c0_7 = arith.constant 0 : index
    %9 = vector.load %arg2[%c1_6, %c0_7] : memref<2x32xf32, #tpu.memory_space<vmem>>, vector<1x32xf32>
    %10 = vector.broadcast %8 : vector<128x1xf32> to vector<128x32xf32>
    %11 = vector.broadcast %9 : vector<1x32xf32> to vector<128x32xf32>
    %12 = arith.mulf %10, %11 : vector<128x32xf32>
    %13 = arith.addf %7, %12 : vector<128x32xf32>
    %c0_8 = arith.constant 0 : index
    %c0_9 = arith.constant 0 : index
    %14 = vector.load %arg4[%c0_8, %c0_9] : memref<32x96xf32, #tpu.memory_space<vmem>>, vector<32x96xf32>
    %cst = arith.constant dense<0.000000e+00> : vector<128x96xf32>
    %15 = tpu.matmul %13, %14, %cst {dimension_numbers = #tpu.dot_dimension_numbers<[1], [0], [0], [1], [0, 0, 1, 1], [], []>} : vector<128x32xf32>, vector<32x96xf32>, vector<128x96xf32> -> vector<128x96xf32>
    %16 = tpu.concatenate %13, %15 in 1 : vector<128x32xf32>, vector<128x96xf32> -> vector<128x128xf32>
    %c0_10 = arith.constant 0 : index
    %c0_11 = arith.constant 0 : index
    %17 = vector.load %arg5[%c0_10, %c0_11] : memref<128x128xf32, #tpu.memory_space<vmem>>, vector<128x128xf32>
    tpu.vector_store %arg5[%c0_10, %c0_11], %16 {strides = array<i32>} : memref<128x128xf32, #tpu.memory_space<vmem>>, vector<128x128xf32>,
    return
  }
  func.func @transform_0(%arg0: i32) -> (i32, i32) {
    %c0_i32 = arith.constant 0 : i32
    %c0_i32_0 = arith.constant 0 : i32
    return %arg0, %c0_i32 : i32, i32
  }
  func.func @transform_1(%arg0: i32) -> (i32, i32) {
    %c0_i32 = arith.constant 0 : i32
    %c0_i32_0 = arith.constant 0 : i32
    %c0_i32_1 = arith.constant 0 : i32
    return %c0_i32, %c0_i32_0 : i32, i32
  }
  func.func @transform_2(%arg0: i32) -> (i32, i32) {
    %c0_i32 = arith.constant 0 : i32
    %c0_i32_0 = arith.constant 0 : i32
    %c0_i32_1 = arith.constant 0 : i32
    return %c0_i32, %c0_i32_0 : i32, i32
  }
  func.func @transform_3(%arg0: i32) -> (i32, i32) {
    %c0_i32 = arith.constant 0 : i32
    %c0_i32_0 = arith.constant 0 : i32
    %c0_i32_1 = arith.constant 0 : i32
    return %c0_i32, %c0_i32_0 : i32, i32
  }
  func.func @transform_4(%arg0: i32) -> (i32, i32) {
    %c0_i32 = arith.constant 0 : i32
    %c0_i32_0 = arith.constant 0 : i32
    return %arg0, %c0_i32 : i32, i32
  }
}

</mosaic_0001>

<bundles_post_ra>
// kernel: precompute_pallas.1
= control target key start
LH: loop header
LB: loop body
LE: loop exit
PB: predicated region body
PF: predicated region fallthrough
CT: control target
= control target key end

     0   :  { %s943_s15 = smov 0   ;;  %s1198_s0 = inlined_call_operand.vmem [shape: f32[256,2], index: 0, kind: input, shape index: {}]   ;;  %s1199_s1 = inlined_call_operand.vmem [shape: f32[2,32], index: 1, kind: input, shape index: {}]   ;;  %s1200_s2 = inlined_call_operand.vmem [shape: f32[1,32], index: 2, kind: input, shape index: {}]   ;;  %s1201_s3 = inlined_call_operand.vmem [shape: f32[32,96], index: 3, kind: input, shape index: {}]   ;;  %s1202_s4 = inlined_call_operand.vmem [shape: f32[256,128], index: 4, kind: output, shape index: {}]  }
   0x1 LB: > { %s792_s16 = sadd.s32 4294967295, %s913_s15   ;;  %p796_p0 = scmp.ge.s32.totalorder %s913_s15, 1  ;;  %s913_s15 = sphi %s943_s15, %s14_s15  }
   0x2   : > { %p163_p1 = scmp.lt.s32.totalorder %s913_s15, 3 }
   0x4   : > { %p164_p2 = pnand %p796_p0, %p163_p1 }
   0x5   : > { %s797_s17 = sshll.u32 (!%p164_p2), %s792_s16, 4  ;;  %v915_v0 = vmov (!%p164_p2), 0   ;;  %v916_v6 = vmov (!%p164_p2), 1   ;;  %v442_v10 = vld [vmem:[%s1201_s3] sm:$0xff] (!%p164_p2)  ;;  %v443_v11 = vld [vmem:[%s1201_s3 + $0x8] sm:$0xff] (!%p164_p2)  ;;  %v444_v14 = vld [vmem:[%s1201_s3 + $0x10] sm:$0xff] (!%p164_p2) }
   0x6   : > { %167 = sbr.rel (%p164_p2) target bundleno = 562 (0x232), region = 36  ;;  %898 = vset.pattern.permute.xlu1 (!%p164_p2), %v915_v0  ;;  %897 = vset.pattern.permute.xlu0 (!%p164_p2), %v915_v0  ;;  %p190_p3 = scmp.lt.s32.totalorder (!%p164_p2), %s797_s17, 31  ;;  %v874_v12 = vpack.c.bf16 (!%p164_p2), %v443_v11, %v442_v10  ;;  %v445_v15 = vld [vmem:[%s1201_s3 + $0x18] sm:$0xff] (!%p164_p2)  ;;  %v997_v26 = vld [vmem:[%s1199_s1] ss:$0 sm:$0xff] (!%p164_p2)  ;;  %vm446_vm0 = vcmask (!%p164_p2), 261120  }
   0x7   : > { %v878_v16 = vpack.c.bf16 (!%p164_p2), %v445_v15, %v444_v14  ;;  %v1003_v30 = vld [vmem:[%s1200_s2] ss:$0 sm:$0xff] (!%p164_p2)  ;;  %v1008_v31 = vld [vmem:[%s1199_s1 + $0x1] ss:$0 sm:$0xff] (!%p164_p2)  ;;  %s917_s10 = smov (!%p164_p2), 32  }
   0x8   : > { %875 = vmatprep.subr.bf16.mxu0 (!%p164_p2), %v874_v12  ;;  %882 = vmatprep.subr.bf16.mxu1 (!%p164_p2), %v874_v12 }
   0x9   : > { %877 = vmatpush3.bf16.msra.mxu0 (!%p164_p2), %v874_v12  ;;  %884 = vmatpush3.bf16.msra.mxu1 (!%p164_p2), %v874_v12 }
   0xa   : > { %879 = vmatprep.subr.bf16.mxu0 (!%p164_p2), %v878_v16  ;;  %883 = vmatprep.subr.bf16.mxu1 (!%p164_p2), %v878_v16 }
   0xd   : > { %s1204_s17 = smov (!%p190_p3, %s797_s17), 31  ;;  %881 = vmatpush3.bf16.msra.mxu0 %v878_v16  ;;  %885 = vmatpush3.bf16.msra.mxu1 %v878_v16 }
   0xe   : > { %s798_s18 = sshll.u32 %s1204_s17, 3 }
   0xf   : > { %s961_s21 = scalar_lea.vmem %s1198_s0, %s798_s18  ;;  %s1145_s13 = scalar_lea.vmem %s1202_s4, %s798_s18 }
  0x10   : > { %v203_v1 = vld [vmem:[%s961_s21 + $0x8] sm:$0xff]  ;;  %v202_v2 = vld [vmem:[%s961_s21] sm:$0xff]  ;;  %v212_v5 = vld [vmem:[%s961_s21 + $0x50] sm:$0xff] }
  0x11   : > { %226 = vperm.xlu1 %898, %v203_v1   ;;  %221 = vperm.xlu0 %897, %v202_v2   ;;  %v211_v3 = vld [vmem:[%s961_s21 + $0x48] sm:$0xff]  ;;  %v210_v4 = vld [vmem:[%s961_s21 + $0x40] sm:$0xff]  ;;  %v216_v8 = vld [vmem:[%s961_s21 + $0x70] sm:$0xff] }
  0x12   : > { %v214_v7 = vld [vmem:[%s961_s21 + $0x60] sm:$0xff]  ;;  %v204_v9 = vld [vmem:[%s961_s21 + $0x10] sm:$0xff]  ;;  %v205_v13 = vld [vmem:[%s961_s21 + $0x18] sm:$0xff] }
  0x13   : > { %v213_v17 = vld [vmem:[%s961_s21 + $0x58] sm:$0xff]  ;;  %v206_v18 = vld [vmem:[%s961_s21 + $0x20] sm:$0xff]  ;;  %v215_v19 = vld [vmem:[%s961_s21 + $0x68] sm:$0xff] }
  0x14   : > { %v207_v20 = vld [vmem:[%s961_s21 + $0x28] sm:$0xff]  ;;  %v208_v21 = vld [vmem:[%s961_s21 + $0x30] sm:$0xff]  ;;  %v217_v22 = vld [vmem:[%s961_s21 + $0x78] sm:$0xff] }
  0x15   : > { %266 = vperm.xlu1 %898, %v211_v3   ;;  %261 = vperm.xlu0 %897, %v210_v4   ;;  %v209_v23 = vld [vmem:[%s961_s21 + $0x38] sm:$0xff] }
  0x19   : > { %899 = vset.pattern.permute.xlu1 %v916_v6  ;;  %271 = vperm.xlu0 %897, %v212_v5  }
  0x1a   : > { %375 = vperm.xlu1 %899, %v210_v4  }
  0x1d   : > { %281 = vperm.xlu0 %897, %v214_v7  }
  0x1e   : > { %347 = vperm.xlu1 %899, %v203_v1  }
  0x21   : > { %291 = vperm.xlu0 %897, %v216_v8  }
  0x22   : > { %900 = vset.pattern.permute.xlu1 %v915_v0 }
  0x23   : > { %231 = vperm.xlu1 %900, %v204_v9  }
  0x25   : > { %905 = vset.pattern.permute.xlu0 %v916_v6 }
  0x26   : > { %343 = vperm.xlu0 %905, %v202_v2  }
  0x27   : > { %236 = vperm.xlu1 %900, %v205_v13  }
  0x2a   : > { %379 = vperm.xlu0 %905, %v211_v3  }
  0x2b   : > { %276 = vperm.xlu1 %900, %v213_v17  }
  0x2e   : > { %351 = vperm.xlu0 %905, %v204_v9  }
  0x2f   : > { %901 = vset.pattern.permute.xlu1 %v916_v6 }
  0x30   : > { %383 = vperm.xlu1 %901, %v212_v5  }
  0x32   : > { %387 = vperm.xlu0 %905, %v213_v17  }
  0x34   : > { %355 = vperm.xlu1 %901, %v205_v13  }
  0x36   : > { %359 = vperm.xlu0 %905, %v206_v18  }
  0x38   : > { %902 = vset.pattern.permute.xlu1 %v915_v0 }
  0x39   : > { %241 = vperm.xlu1 %902, %v206_v18  }
  0x3a   : > { %395 = vperm.xlu0 %905, %v215_v19  }
  0x3d   : > { %246 = vperm.xlu1 %902, %v207_v20  }
  0x3e   : > { %367 = vperm.xlu0 %905, %v208_v21  }
  0x41   : > { %286 = vperm.xlu1 %902, %v215_v19  }
  0x42   : > { %403 = vperm.xlu0 %905, %v217_v22  }
  0x45   : > { %903 = vset.pattern.permute.xlu1 %v916_v6 }
  0x46   : > { %391 = vperm.xlu1 %903, %v214_v7  }
  0x4a   : > { %363 = vperm.xlu1 %903, %v207_v20  }
  0x4e   : > { %904 = vset.pattern.permute.xlu1 %v915_v0 }
  0x4f   : > { %251 = vperm.xlu1 %904, %v208_v21  }
  0x53   : > { %256 = vperm.xlu1 %904, %v209_v23  }
  0x57   : > { %296 = vperm.xlu1 %904, %v217_v22  }
  0x5b   : > { %906 = vset.pattern.permute.xlu1 %v916_v6 }
  0x5c   : > { %399 = vperm.xlu1 %906, %v216_v8  }
  0x60   : > { %371 = vperm.xlu1 %906, %v209_v23  }
  0x90   : > { %v227_v24 = vpop.permute.xlu1 %226  ;;  %v222_v25 = vpop.permute.xlu0 %221 }
  0x91   : > { %v303_v39 = vmul.f32 %v997_v26, %v222_v25  ;;  %v304_v42 = vmul.f32 %v997_v26, %v227_v24 }
  0x93   : > { %v325_v43 = vadd.f32 %v1003_v30, %v303_v39  ;;  %v326_v49 = vadd.f32 %v1003_v30, %v304_v42 }
  0x94   : > { %v267_v27 = vpop.permute.xlu1 %266  ;;  %v262_v28 = vpop.permute.xlu0 %261 }
  0x95   : > { %v311_v29 = vmul.f32 %v997_v26, %v262_v28  ;;  %v312_v46 = vmul.f32 %v997_v26, %v267_v27 }
  0x97   : > { %v333_v32 = vadd.f32 %v1003_v30, %v311_v29  ;;  %v334_v53 = vadd.f32 %v1003_v30, %v312_v46 }
  0x98   : > { %v272_v33 = vpop.permute.xlu0 %271 }
  0x99   : > { %v376_v34 = vpop.permute.xlu1 %375  ;;  %v313_v54 = vmul.f32 %v997_v26, %v272_v33 }
  0x9a   : > { %v418_v35 = vmul.f32 %v1008_v31, %v376_v34 }
  0x9b   : > { %v335_v60 = vadd.f32 %v1003_v30, %v313_v54 }
  0x9c   : > { %v282_v36 = vpop.permute.xlu0 %281  ;;  %v1012_v37 = vadd.f32 %v418_v35, %v333_v32 }
  0x9d   : > { %v348_v38 = vpop.permute.xlu1 %347  ;;  %v315_v22 = vmul.f32 %v997_v26, %v282_v36 }
  0x9e   : > { %862 = vmatprep.mubr.msk.f32.mxu1 %vm446_vm0, %v1012_v37  ;;  %v411_v44 = vmul.f32 %v1008_v31, %v348_v38 }
  0x9f   : > { %v337_v28 = vadd.f32 %v1003_v30, %v315_v22 }
  0xa0   : > { %v1017_v40 = vpop.permute.xlu0 %291  ;;  %v1027_v51 = vadd.f32 %v411_v44, %v326_v49 }
  0xa2   : > { %v232_v41 = vpop.permute.xlu1 %231 }
  0xa3   : > { %v305_v55 = vmul.f32 %v997_v26, %v232_v41 }
  0xa5   : > { %v344_v45 = vpop.permute.xlu0 %343  ;;  %v327_v61 = vadd.f32 %v1003_v30, %v305_v55 }
  0xa6   : > { %v410_v47 = vmul.f32 %v1008_v31, %v344_v45  ;;  %v237_v48 = vpop.permute.xlu1 %236 }
  0xa7   : > { %v306_v1 = vmul.f32 %v997_v26, %v237_v48 }
  0xa8   : > { %v1025_v50 = vadd.f32 %v410_v47, %v325_v43 }
  0xa9   : > { %v380_v52 = vpop.permute.xlu0 %379  ;;  %v328_v9 = vadd.f32 %v1003_v30, %v306_v1 }
  0xaa   : > { %v419_v56 = vmul.f32 %v1008_v31, %v380_v52  ;;  %v277_v57 = vpop.permute.xlu1 %276  ;;  %850 = vmatprep.mubr.msk.f32.mxu0 %vm446_vm0, %v1025_v50  ;;  %v317_v52 = vmul.f32 %v997_v26, %v1017_v40 }
  0xab   : > { %851 = vmatmul.mubr.msk.f32.vlgmr.msra.gmra.mrb[0].mxu0 %vm446_vm0, %v1027_v51  ;;  %v314_v62 = vmul.f32 %v997_v26, %v277_v57 }
  0xac   : > { %v1037_v58 = vadd.f32 %v419_v56, %v334_v53  ;;  %v339_v56 = vadd.f32 %v1003_v30, %v317_v52 }
  0xad   : > { %v352_v59 = vpop.permute.xlu0 %351  ;;  %v336_v5 = vadd.f32 %v1003_v30, %v314_v62 }
  0xae   : > { %v412_v63 = vmul.f32 %v1008_v31, %v352_v59  ;;  %863 = vmatmul.mubr.msk.f32.vlgmr.msra.gmra.mrb[0].mxu1 %vm446_vm0, %v1037_v58 }
  0xaf   : > { %v384_v0 = vpop.permute.xlu1 %383 }
  0xb0   : > { %v1046_v2 = vadd.f32 %v412_v63, %v327_v61  ;;  %v420_v3 = vmul.f32 %v1008_v31, %v384_v0 }
  0xb1   : > { %v388_v4 = vpop.permute.xlu0 %387 }
  0xb2   : > { %v1050_v6 = vadd.f32 %v420_v3, %v335_v60  ;;  %v421_v7 = vmul.f32 %v1008_v31, %v388_v4  ;;  %853 = vmatprep.mubr.msk.f32.mxu0 %vm446_vm0, %v1046_v2 }
  0xb3   : > { %v356_v8 = vpop.permute.xlu1 %355 }
  0xb4   : > { %v1056_v10 = vadd.f32 %v421_v7, %v336_v5  ;;  %v413_v11 = vmul.f32 %v1008_v31, %v356_v8  ;;  %865 = vmatprep.mubr.msk.f32.mxu1 %vm446_vm0, %v1050_v6 }
  0xb5   : > { %v360_v13 = vpop.permute.xlu0 %359 }
  0xb6   : > { %v1061_v12 = vadd.f32 %v413_v11, %v328_v9  ;;  %866 = vmatmul.mubr.msk.f32.gmra.mrb[2].mxu1 %vm446_vm0, %v1056_v10  ;;  %v414_v16 = vmul.f32 %v1008_v31, %v360_v13 }
  0xb8   : > { %v242_v14 = vpop.permute.xlu1 %241  ;;  %854 = vmatmul.mubr.msk.f32.gmra.mrb[2].mxu0 %vm446_vm0, %v1061_v12 }
  0xb9   : > { %v307_v15 = vmul.f32 %v997_v26, %v242_v14  ;;  %v396_v23 = vpop.permute.xlu0 %395 }
  0xba   : > { %v423_v24 = vmul.f32 %v1008_v31, %v396_v23 }
  0xbb   : > { %v329_v17 = vadd.f32 %v1003_v30, %v307_v15 }
  0xbc   : > { %v247_v18 = vpop.permute.xlu1 %246 }
  0xbd   : > { %v1070_v19 = vadd.f32 %v414_v16, %v329_v17  ;;  %v308_v29 = vmul.f32 %v997_v26, %v247_v18  ;;  %v368_v43 = vpop.permute.xlu0 %367 }
  0xbe   : > { %v416_v44 = vmul.f32 %v1008_v31, %v368_v43 }
  0xbf   : > { %856 = vmatprep.mubr.msk.f32.mxu0 %vm446_vm0, %v1070_v19  ;;  %v330_v38 = vadd.f32 %v1003_v30, %v308_v29 }
  0xc0   : > { %v287_v20 = vpop.permute.xlu1 %286 }
  0xc1   : > { %v316_v21 = vmul.f32 %v997_v26, %v287_v20  ;;  %v404_v53 = vpop.permute.xlu0 %403 }
  0xc2   : > { %v425_v60 = vmul.f32 %v1008_v31, %v404_v53 }
  0xc3   : > { %v338_v25 = vadd.f32 %v1003_v30, %v316_v21 }
  0xc5   : > { %v392_v27 = vpop.permute.xlu1 %391  ;;  %v1083_v34 = vadd.f32 %v423_v24, %v338_v25 }
  0xc6   : > { %v422_v32 = vmul.f32 %v1008_v31, %v392_v27 }
  0xc8   : > { %v1081_v33 = vadd.f32 %v422_v32, %v337_v28 }
  0xc9   : > { %v364_v35 = vpop.permute.xlu1 %363 }
  0xca   : > { %v415_v36 = vmul.f32 %v1008_v31, %v364_v35  ;;  %868 = vmatprep.mubr.msk.f32.mxu1 %vm446_vm0, %v1081_v33 }
  0xcb   : > { %869 = vmatmul.mubr.msk.f32.gmra.mrb[4].mxu1 %vm446_vm0, %v1083_v34 }
  0xcc   : > { %v1091_v39 = vadd.f32 %v415_v36, %v330_v38 }
  0xce   : > { %v252_v41 = vpop.permute.xlu1 %251  ;;  %857 = vmatmul.mubr.msk.f32.gmra.mrb[4].mxu0 %vm446_vm0, %v1091_v39 }
  0xcf   : > { %v309_v42 = vmul.f32 %v997_v26, %v252_v41 }
  0xd1   : > { %v331_v45 = vadd.f32 %v1003_v30, %v309_v42 }
  0xd2   : > { %v257_v46 = vpop.permute.xlu1 %256 }
  0xd3   : > { %v1098_v47 = vadd.f32 %v416_v44, %v331_v45  ;;  %v310_v57 = vmul.f32 %v997_v26, %v257_v46 }
  0xd5   : > { %859 = vmatprep.mubr.msk.f32.mxu0 %vm446_vm0, %v1098_v47  ;;  %v332_v0 = vadd.f32 %v1003_v30, %v310_v57 }
  0xd6   : > { %v297_v48 = vpop.permute.xlu1 %296 }
  0xd7   : > { %v318_v49 = vmul.f32 %v997_v26, %v297_v48 }
  0xd9   : > { %v340_v54 = vadd.f32 %v1003_v30, %v318_v49 }
  0xdb   : > { %v400_v55 = vpop.permute.xlu1 %399  ;;  %v1112_v62 = vadd.f32 %v425_v60, %v340_v54 }
  0xdc   : > { %v424_v59 = vmul.f32 %v1008_v31, %v400_v55 }
  0xde   : > { %v1110_v61 = vadd.f32 %v424_v59, %v339_v56 }
  0xdf   : > { %v372_v63 = vpop.permute.xlu1 %371 }
  0xe0   : > { %v417_v40 = vmul.f32 %v1008_v31, %v372_v63  ;;  %871 = vmatprep.mubr.msk.f32.mxu1 %vm446_vm0, %v1110_v61 }
  0xe1   : > { %872 = vmatmul.mubr.msk.f32.gmra.mrb[6].mxu1 %vm446_vm0, %v1112_v62 }
  0xe2   : > { %v1120_v26 = vadd.f32 %v417_v40, %v332_v0 }
  0xe4   : > { %860 = vmatmul.mubr.msk.f32.gmra.mrb[6].mxu0 %vm446_vm0, %v1120_v26 }
 0x17e   : > { %v852_v1 = vpop.f32.mrb[0].mxu0 }
 0x17f   : > { %658 = vrot.lane.b32.xlu0 %v852_v1, %s917_s10  ;;  %v561_v3 = vpop.f32.mrb[1].mxu0 }
 0x180   : > { %656 = vrot.lane.b32.xlu1 %v561_v3, %s917_s10 }
 0x181   : > { %v864_v30 = vpop.f32.mrb[0].mxu1 }
 0x182   : > { %v601_v31 = vpop.f32.mrb[1].mxu1 }
 0x183   : > { %674 = vrot.lane.b32.xlu0 %v864_v30, %s917_s10 }
 0x184   : > { %672 = vrot.lane.b32.xlu1 %v601_v31, %s917_s10 }
 0x189   : > { %v867_v4 = vpop.f32.mrb[2].mxu1 }
 0x18a   : > { %v611_v5 = vpop.f32.mrb[3].mxu1 }
 0x18b   : > { %v855_v7 = vpop.f32.mrb[2].mxu0 }
 0x18c   : > { %662 = vrot.lane.b32.xlu0 %v855_v7, %s917_s10  ;;  %v571_v8 = vpop.f32.mrb[3].mxu0 }
 0x18d   : > { %660 = vrot.lane.b32.xlu1 %v571_v8, %s917_s10 }
 0x190   : > { %678 = vrot.lane.b32.xlu0 %v867_v4, %s917_s10 }
 0x191   : > { %676 = vrot.lane.b32.xlu1 %v611_v5, %s917_s10 }
 0x19e   : > { %v870_v9 = vpop.f32.mrb[4].mxu1 }
 0x19f   : > { %v621_v11 = vpop.f32.mrb[5].mxu1 }
 0x1a1   : > { %v858_v13 = vpop.f32.mrb[4].mxu0 }
 0x1a2   : > { %666 = vrot.lane.b32.xlu0 %v858_v13, %s917_s10  ;;  %v581_v14 = vpop.f32.mrb[5].mxu0 }
 0x1a3   : > { %664 = vrot.lane.b32.xlu1 %v581_v14, %s917_s10 }
 0x1a6   : > { %682 = vrot.lane.b32.xlu0 %v870_v9, %s917_s10 }
 0x1a7   : > { %680 = vrot.lane.b32.xlu1 %v621_v11, %s917_s10 }
 0x1b4   : > { %v873_v15 = vpop.f32.mrb[6].mxu1 }
 0x1b5   : > { %v631_v16 = vpop.f32.mrb[7].mxu1 }
 0x1b7   : > { %v861_v17 = vpop.f32.mrb[6].mxu0 }
 0x1b8   : > { %670 = vrot.lane.b32.xlu0 %v861_v17, %s917_s10  ;;  %v591_v18 = vpop.f32.mrb[7].mxu0 }
 0x1b9   : > { %668 = vrot.lane.b32.xlu1 %v591_v18, %s917_s10 }
 0x1bc   : > { %686 = vrot.lane.b32.xlu0 %v873_v15, %s917_s10 }
 0x1bd   : > { %684 = vrot.lane.b32.xlu1 %v631_v16, %s917_s10 }
 0x1f1   : > { %v659_v20 = vpop.permute.xlu0 %658 }
 0x1f2   : > { %v705_v21 = vsel %vm446_vm0, %v1027_v51, %v659_v20  ;;  %v657_v22 = vpop.permute.xlu1 %656 }
 0x1f3   : > { %721 = vst [vmem:[%s1145_s13 + $0x8] sm:$0xff] %v705_v21  ;;  %v704_v23 = vsel %vm446_vm0, %v1025_v50, %v657_v22 }
 0x1f4   : > { %720 = vst [vmem:[%s1145_s13] sm:$0xff] %v704_v23 }
 0x1f5   : > { %v675_v24 = vpop.permute.xlu0 %674 }
 0x1f6   : > { %v713_v25 = vsel %vm446_vm0, %v1037_v58, %v675_v24  ;;  %v673_v27 = vpop.permute.xlu1 %672 }
 0x1f7   : > { %729 = vst [vmem:[%s1145_s13 + $0x48] sm:$0xff] %v713_v25  ;;  %v712_v28 = vsel %vm446_vm0, %v1012_v37, %v673_v27 }
 0x1f8   : > { %728 = vst [vmem:[%s1145_s13 + $0x40] sm:$0xff] %v712_v28 }
 0x1fe   : > { %v663_v51 = vpop.permute.xlu0 %662 }
 0x1ff   : > { %v707_v29 = vsel %vm446_vm0, %v1061_v12, %v663_v51  ;;  %v661_v50 = vpop.permute.xlu1 %660 }
 0x200   : > { %723 = vst [vmem:[%s1145_s13 + $0x18] sm:$0xff] %v707_v29  ;;  %v706_v32 = vsel %vm446_vm0, %v1046_v2, %v661_v50 }
 0x201   : > { %722 = vst [vmem:[%s1145_s13 + $0x10] sm:$0xff] %v706_v32 }
 0x202   : > { %v679_v58 = vpop.permute.xlu0 %678 }
 0x203   : > { %v715_v35 = vsel %vm446_vm0, %v1056_v10, %v679_v58  ;;  %v677_v37 = vpop.permute.xlu1 %676 }
 0x204   : > { %731 = vst [vmem:[%s1145_s13 + $0x58] sm:$0xff] %v715_v35  ;;  %v714_v38 = vsel %vm446_vm0, %v1050_v6, %v677_v37 }
 0x205   : > { %730 = vst [vmem:[%s1145_s13 + $0x50] sm:$0xff] %v714_v38 }
 0x214   : > { %v667_v12 = vpop.permute.xlu0 %666 }
 0x215   : > { %v709_v36 = vsel %vm446_vm0, %v1091_v39, %v667_v12  ;;  %v665_v2 = vpop.permute.xlu1 %664 }
 0x216   : > { %725 = vst [vmem:[%s1145_s13 + $0x28] sm:$0xff] %v709_v36  ;;  %v708_v41 = vsel %vm446_vm0, %v1070_v19, %v665_v2 }
 0x217   : > { %724 = vst [vmem:[%s1145_s13 + $0x20] sm:$0xff] %v708_v41 }
 0x218   : > { %v683_v10 = vpop.permute.xlu0 %682 }
 0x219   : > { %v717_v42 = vsel %vm446_vm0, %v1083_v34, %v683_v10  ;;  %v681_v6 = vpop.permute.xlu1 %680 }
 0x21a   : > { %733 = vst [vmem:[%s1145_s13 + $0x68] sm:$0xff] %v717_v42  ;;  %v716_v43 = vsel %vm446_vm0, %v1081_v33, %v681_v6 }
 0x21b   : > { %732 = vst [vmem:[%s1145_s13 + $0x60] sm:$0xff] %v716_v43 }
 0x22a   : > { %v671_v39 = vpop.permute.xlu0 %670 }
 0x22b   : > { %v711_v44 = vsel %vm446_vm0, %v1120_v26, %v671_v39  ;;  %v669_v45 = vpop.permute.xlu1 %668 }
 0x22c   : > { %727 = vst [vmem:[%s1145_s13 + $0x38] sm:$0xff] %v711_v44  ;;  %v710_v19 = vsel %vm446_vm0, %v1098_v47, %v669_v45 }
 0x22d   : > { %726 = vst [vmem:[%s1145_s13 + $0x30] sm:$0xff] %v710_v19 }
 0x22e   : > { %v687_v46 = vpop.permute.xlu0 %686 }
 0x22f   : > { %v719_v34 = vsel %vm446_vm0, %v1112_v62, %v687_v46  ;;  %v685_v48 = vpop.permute.xlu1 %684 }
 0x230   : > { %735 = vst [vmem:[%s1145_s13 + $0x78] sm:$0xff] %v719_v34  ;;  %v718_v33 = vsel %vm446_vm0, %v1110_v61, %v685_v48 }
 0x231   : > { %734 = vst [vmem:[%s1145_s13 + $0x70] sm:$0xff] %v718_v33 }
 0x232 PF: > { %s14_s15 = sadd.s32 1, %s913_s15  }
 0x233   : > { %p11_p4 = scmp.ge.s32.totalorder %s14_s15, 4  }
 0x235   :  { %13 = sbr.rel (!%p11_p4) target bundleno = 1 (0x1), region = 66 }

</bundles_post_ra>
